<compile_context>
chip_gen: v7x
topology: tpu7x:2x2x1
jax: 0.10.0
libtpu: 0.0.40
codegen_flags: <defaults>
</compile_context>

<pallas_src>
import jax
import jax.numpy as jnp
from jax.experimental import pallas as pl
from jax.experimental.pallas import tpu as pltpu


def _plerp_kernel(x1_ref, x2_ref, w1_ref, w2_ref, b_ref, o_ref):
    # x1_ref/x2_ref/o_ref: (1, C, TILE) blocks of the (N, C, H*W) tensors.
    # w1_ref/w2_ref      : (C, C) halves of the 1x1-conv weight (resident).
    # b_ref              : (C, 1) bias.
    x1 = x1_ref[0]                       # (C, TILE)
    x2 = x2_ref[0]                       # (C, TILE)

    # 1x1 conv over concatenated channels:  W @ [x1; x2] == W1 @ x1 + W2 @ x2
    # (MXU accumulates in f32; works for f32 or bf16 inputs without upcast).
    logits = (
        jnp.dot(w1_ref[...], x1, preferred_element_type=jnp.float32)
        + jnp.dot(w2_ref[...], x2, preferred_element_type=jnp.float32)
        + b_ref[...]
    )
    w = jax.nn.sigmoid(logits)

    # torch.lerp(x1, x2, w) = x1 + w * (x2 - x1)   (lerp math in f32)
    x1f = x1.astype(jnp.float32)
    x2f = x2.astype(jnp.float32)
    o_ref[0] = (x1f + w * (x2f - x1f)).astype(o_ref.dtype)


def _choose_tile_hw(L, C, itemsize, *, max_tile=4096,
                    vmem_budget_bytes=6 * 1024 * 1024):
    """Largest lane tile (multiple of 128, or the full row) that divides L and
    keeps the double-buffered working set (x1 + x2 + out, 2 buffers each)
    under `vmem_budget_bytes` -- comfortably below the default scoped VMEM on
    every generation (tightest: v5e's 16 MiB default, v7x's 64 MiB physical)."""
    cap = max(128, vmem_budget_bytes // (6 * C * itemsize))
    cap = min(cap, max_tile)
    if L <= cap:
        return L                          # full row is always a legal block dim
    cap = (cap // 128) * 128
    if L % 128 == 0:
        for t in range(cap, 0, -128):
            if L % t == 0:
                return t
    return None                           # no clean 128-multiple divisor


def plerp2d(x1, x2, weight, bias):
    """x1, x2: (N, C, H, W). weight: (C, 2C) (1x1-conv kernel squeezed),
    bias: (C,). Returns (N, C, H, W)."""
    N, C, H, W = x1.shape
    assert x2.shape == x1.shape
    L = H * W
    out_dtype = x1.dtype

    # Free reshapes: NCHW is already contiguous as (N, C, H*W).
    x1r = x1.reshape(N, C, L)
    x2r = x2.reshape(N, C, L)

    # Split the conv weight for the two concatenated halves.  No transpose:
    # channels are contracted on the left (W1 @ x_blk).
    w1 = weight[:, :C].astype(x1.dtype)           # (C, C)
    w2 = weight[:, C:].astype(x1.dtype)           # (C, C)
    b = bias.reshape(C, 1).astype(jnp.float32)    # (C, 1)

    itemsize = jnp.dtype(x1.dtype).itemsize
    tile = _choose_tile_hw(L, C, itemsize)

    L_pad = L
    if tile is None:
        # Rare ragged case (H*W not a multiple of 128 and too large for one
        # block): pad only the pixel axis up to a tile multiple.
        # TODO(synk): handle the ragged tail with a masked store instead of a pad copy.
        tile = max(128, min(4096, (6 * 1024 * 1024) // (6 * C * itemsize)))
        tile = (tile // 128) * 128
        L_pad = ((L + tile - 1) // tile) * tile
        pad = L_pad - L
        x1r = jnp.pad(x1r, ((0, 0), (0, 0), (0, pad)))
        x2r = jnp.pad(x2r, ((0, 0), (0, 0), (0, pad)))

    grid = (N, L_pad // tile)

    out = pl.pallas_call(
        _plerp_kernel,
        out_shape=jax.ShapeDtypeStruct((N, C, L_pad), out_dtype),
        grid_spec=pltpu.PrefetchScalarGridSpec(
            num_scalar_prefetch=0,
            grid=grid,
            in_specs=[
                pl.BlockSpec((1, C, tile), lambda n, t: (n, 0, t)),   # x1 block
                pl.BlockSpec((1, C, tile), lambda n, t: (n, 0, t)),   # x2 block
                pl.BlockSpec((C, C), lambda n, t: (0, 0)),            # W1 (resident)
                pl.BlockSpec((C, C), lambda n, t: (0, 0)),            # W2 (resident)
                pl.BlockSpec((C, 1), lambda n, t: (0, 0)),            # bias
            ],
            out_specs=pl.BlockSpec((1, C, tile), lambda n, t: (n, 0, t)),
        ),
        compiler_params=pltpu.CompilerParams(
            dimension_semantics=("parallel", "parallel"),
        ),
    )(x1r, x2r, w1, w2, b)

    if L_pad != L:
        out = out[:, :, :L]
    return out.reshape(N, C, H, W)


def plerp2d_reference(x1, x2, weight, bias):
    """Pure-JAX reference mirroring the PyTorch forward."""
    xcat = jnp.concatenate([x1, x2], axis=1)                       # (N, 2C, H, W)
    logits = jnp.einsum("nchw,oc->nohw", xcat, weight) + bias[None, :, None, None]
    w = jax.nn.sigmoid(logits)
    return x1 + w * (x2 - x1)


if __name__ == "__main__":
    key = jax.random.PRNGKey(0)
    k_x1, k_x2, k_w, k_b = jax.random.split(key, 4)

    N, C, H, W = 2, 4, 16, 16
    x1 = jax.random.normal(k_x1, (N, C, H, W), dtype=jnp.float32)
    x2 = jax.random.normal(k_x2, (N, C, H, W), dtype=jnp.float32)

    # Conv1x1 params: weight (C, 2C, 1, 1) squeezed to (C, 2C).  PyTorch default
    # init is uniform(-1/sqrt(fan_in), 1/sqrt(fan_in)), fan_in = 2C.
    fan_in = 2 * C
    bound = 1.0 / (fan_in ** 0.5)
    weight = jax.random.uniform(k_w, (C, 2 * C), dtype=jnp.float32,
                                minval=-bound, maxval=bound)
    bias = jax.random.uniform(k_b, (C,), dtype=jnp.float32,
                              minval=-bound, maxval=bound)

    out = plerp2d(x1, x2, weight, bias)
    out = jax.block_until_ready(out)

    ref = plerp2d_reference(x1, x2, weight, bias)
    assert out.shape == (N, C, H, W)
    assert jnp.allclose(out, ref, atol=1e-5, rtol=1e-5), "mismatch vs reference"

    print("KERNEL_OK")
</pallas_src>

<mosaic_0001>
module attributes {stable_mosaic.version = 11 : i64} {
  func.func @_plerp_kernel(%arg0: i32, %arg1: i32, %arg2: memref<1x4x256xf32, #tpu.memory_space<vmem>>, %arg3: memref<1x4x256xf32, #tpu.memory_space<vmem>>, %arg4: memref<4x4xf32, #tpu.memory_space<vmem>>, %arg5: memref<4x4xf32, #tpu.memory_space<vmem>>, %arg6: memref<4x1xf32, #tpu.memory_space<vmem>>, %arg7: memref<1x4x256xf32, #tpu.memory_space<vmem>>) attributes {dimension_semantics = [#tpu.dimension_semantics<parallel>, #tpu.dimension_semantics<parallel>], iteration_bounds = array<i64: 2, 1>, scalar_prefetch = 0 : i64, scratch_operands = 0 : i64, tpu.core_type = #tpu.core_type<tc>, window_params = [{transform_indices = @transform_0, window_bounds = array<i64: 1, 4, 256>}, {transform_indices = @transform_1, window_bounds = array<i64: 1, 4, 256>}, {pipeline_mode = #tpu.pipeline_mode<synchronous>, transform_indices = @transform_2, window_bounds = array<i64: 4, 4>}, {pipeline_mode = #tpu.pipeline_mode<synchronous>, transform_indices = @transform_3, window_bounds = array<i64: 4, 4>}, {pipeline_mode = #tpu.pipeline_mode<synchronous>, transform_indices = @transform_4, window_bounds = array<i64: 4, 1>}, {transform_indices = @transform_5, window_bounds = array<i64: 1, 4, 256>}]} {
    %c0 = arith.constant 0 : index
    %c0_0 = arith.constant 0 : index
    %c0_1 = arith.constant 0 : index
    %0 = vector.load %arg2[%c0, %c0_0, %c0_1] : memref<1x4x256xf32, #tpu.memory_space<vmem>>, vector<1x4x256xf32>
    %1 = vector.shape_cast %0 : vector<1x4x256xf32> to vector<4x256xf32>
    %c0_2 = arith.constant 0 : index
    %c0_3 = arith.constant 0 : index
    %c0_4 = arith.constant 0 : index
    %2 = vector.load %arg3[%c0_2, %c0_3, %c0_4] : memref<1x4x256xf32, #tpu.memory_space<vmem>>, vector<1x4x256xf32>
    %3 = vector.shape_cast %2 : vector<1x4x256xf32> to vector<4x256xf32>
    %c0_5 = arith.constant 0 : index
    %c0_6 = arith.constant 0 : index
    %4 = vector.load %arg4[%c0_5, %c0_6] : memref<4x4xf32, #tpu.memory_space<vmem>>, vector<4x4xf32>
    %cst = arith.constant dense<0.000000e+00> : vector<4x256xf32>
    %5 = tpu.matmul %4, %1, %cst {dimension_numbers = #tpu.dot_dimension_numbers<[1], [0], [0], [1], [0, 0, 1, 1], [], []>} : vector<4x4xf32>, vector<4x256xf32>, vector<4x256xf32> -> vector<4x256xf32>
    %c0_7 = arith.constant 0 : index
    %c0_8 = arith.constant 0 : index
    %6 = vector.load %arg5[%c0_7, %c0_8] : memref<4x4xf32, #tpu.memory_space<vmem>>, vector<4x4xf32>
    %cst_9 = arith.constant dense<0.000000e+00> : vector<4x256xf32>
    %7 = tpu.matmul %6, %3, %cst_9 {dimension_numbers = #tpu.dot_dimension_numbers<[1], [0], [0], [1], [0, 0, 1, 1], [], []>} : vector<4x4xf32>, vector<4x256xf32>, vector<4x256xf32> -> vector<4x256xf32>
    %8 = arith.addf %5, %7 : vector<4x256xf32>
    %c0_10 = arith.constant 0 : index
    %c0_11 = arith.constant 0 : index
    %9 = vector.load %arg6[%c0_10, %c0_11] : memref<4x1xf32, #tpu.memory_space<vmem>>, vector<4x1xf32>
    %10 = vector.broadcast %9 : vector<4x1xf32> to vector<4x256xf32>
    %11 = arith.addf %8, %10 : vector<4x256xf32>
    %12 = arith.negf %11 : vector<4x256xf32>
    %13 = math.exp %12 : vector<4x256xf32>
    %cst_12 = arith.constant 1.000000e+00 : f32
    %14 = vector.broadcast %cst_12 : f32 to vector<4x256xf32>
    %15 = arith.addf %14, %13 : vector<4x256xf32>
    %16 = arith.divf %14, %15 : vector<4x256xf32>
    %17 = arith.subf %3, %1 : vector<4x256xf32>
    %18 = arith.mulf %16, %17 : vector<4x256xf32>
    %19 = arith.addf %1, %18 : vector<4x256xf32>
    %c0_13 = arith.constant 0 : index
    %c0_14 = arith.constant 0 : index
    %c0_15 = arith.constant 0 : index
    %20 = vector.load %arg7[%c0_13, %c0_14, %c0_15] : memref<1x4x256xf32, #tpu.memory_space<vmem>>, vector<1x4x256xf32>
    %21 = vector.shape_cast %20 : vector<1x4x256xf32> to vector<4x256xf32>
    %22 = vector.shape_cast %19 : vector<4x256xf32> to vector<1x4x256xf32>
    tpu.vector_store %arg7[%c0_13, %c0_14, %c0_15], %22 {strides = array<i32>} : memref<1x4x256xf32, #tpu.memory_space<vmem>>, vector<1x4x256xf32>,
    return
  }
  func.func @transform_0(%arg0: i32, %arg1: i32) -> (i32, i32, i32) {
    %c0_i32 = arith.constant 0 : i32
    %c0_i32_0 = arith.constant 0 : i32
    return %arg0, %c0_i32, %arg1 : i32, i32, i32
  }
  func.func @transform_1(%arg0: i32, %arg1: i32) -> (i32, i32, i32) {
    %c0_i32 = arith.constant 0 : i32
    %c0_i32_0 = arith.constant 0 : i32
    return %arg0, %c0_i32, %arg1 : i32, i32, i32
  }
  func.func @transform_2(%arg0: i32, %arg1: i32) -> (i32, i32) {
    %c0_i32 = arith.constant 0 : i32
    %c0_i32_0 = arith.constant 0 : i32
    %c0_i32_1 = arith.constant 0 : i32
    return %c0_i32, %c0_i32_0 : i32, i32
  }
  func.func @transform_3(%arg0: i32, %arg1: i32) -> (i32, i32) {
    %c0_i32 = arith.constant 0 : i32
    %c0_i32_0 = arith.constant 0 : i32
    %c0_i32_1 = arith.constant 0 : i32
    return %c0_i32, %c0_i32_0 : i32, i32
  }
  func.func @transform_4(%arg0: i32, %arg1: i32) -> (i32, i32) {
    %c0_i32 = arith.constant 0 : i32
    %c0_i32_0 = arith.constant 0 : i32
    %c0_i32_1 = arith.constant 0 : i32
    return %c0_i32, %c0_i32_0 : i32, i32
  }
  func.func @transform_5(%arg0: i32, %arg1: i32) -> (i32, i32, i32) {
    %c0_i32 = arith.constant 0 : i32
    %c0_i32_0 = arith.constant 0 : i32
    return %arg0, %c0_i32, %arg1 : i32, i32, i32
  }
}

</mosaic_0001>

<bundles_post_ra>
// kernel: tpu_custom_call.1
= control target key start
LH: loop header
LB: loop body
LE: loop exit
PB: predicated region body
PF: predicated region fallthrough
CT: control target
= control target key end

     0   :  { %10 = vsyncpa [#allocation3], 0  ;;  %s1158_s0 = inlined_call_operand.hbm [shape: f32[2,4,256], index: 0, kind: input, shape index: {}]   ;;  %s1159_s1 = inlined_call_operand.hbm [shape: f32[2,4,256], index: 1, kind: input, shape index: {}]   ;;  %s1160_s2 = inlined_call_operand.vmem [shape: f32[4,4], index: 2, kind: input, shape index: {}]   ;;  %s1161_s3 = inlined_call_operand.vmem [shape: f32[4,4], index: 3, kind: input, shape index: {}]   ;;  %s1162_s4 = inlined_call_operand.vmem [shape: f32[4,1], index: 4, kind: input, shape index: {}]   ;;  %s1163_s5 = inlined_call_operand.hbm [shape: f32[2,4,256], index: 5, kind: output, shape index: {}]  }
   0x1   :  { %12 = vsyncpa [#allocation3 + $0x1], 0 }
   0x2   :  { %13 = vsyncpa [#allocation6], 0 }
   0x3   :  { %15 = vsyncpa [#allocation6 + $0x1], 0 }
   0x4   :  { %16 = vsyncpa [#allocation4], 0 }
   0x5   :  { %18 = vsyncpa [#allocation4 + $0x1], 0  ;;  %s924_s18 = smov 0   ;;  %s926_s19 = smov 0  }
   0x6   :  { %s928_s20 = smov 0   ;;  %s930_s21 = smov 0  }
   0x7   :  { %s932_s22 = smov 0   ;;  %s934_s23 = smov 0  }
   0x8 LB: > { %s629_s24 = sadd.s32 4294967295, %s887_s23   ;;  %s630_s25 = sadd.s32 4294967294, %s887_s23   ;;  %s887_s23 = sphi %s934_s23, %s24_s23   ;;  %s883_s22 = sphi %s932_s22, %s1183_s22   ;;  %s879_s21 = sphi %s930_s21, %s1182_s21   ;;  %s875_s20 = sphi %s928_s20, %s1181_s20   ;;  %s871_s19 = sphi %s926_s19, %s1180_s19   ;;  %s867_s18 = sphi %s924_s18, %s1179_s18  }
   0x9   : > { %s36_s26 = sadd.s32 1, %s883_s22  ;;  %s45_s27 = sadd.s32 1, %s875_s20 }
   0xa   : > { %p38_p0 = scmp.ge.s32.totalorder %s36_s26, 2  ;;  %p52_p1 = scmp.ne.s32.totalorder %s875_s20, %s871_s19 }
   0xb   : > { %p53_p2 = scmp.eq.s32.totalorder %s887_s23, 0  ;;  %p58_p3 = scmp.ne.s32.totalorder %s871_s19, %s867_s18 }
   0xc   : > { %s1185_s26 = smov (%p38_p0, %s36_s26), 0  ;;  %p59_p5 = scmp.eq.s32.totalorder %s629_s24, 0 }
   0xd   : > { %p965_p4 = por %p53_p2, %p52_p1  ;;  %s40_s29 = ssub.s32 %s883_s22, %s1185_s26 }
   0xe   : > { %p175_p6 = scmp.eq.s32.totalorder %s629_s24, 1  ;;  %p43_p7 = scmp.eq.s32.totalorder %s40_s29, 0 }
   0xf   : > { %p971_p8 = por %p59_p5, %p58_p3  ;;  %p181_p10 = scmp.eq.s32.totalorder %s630_s25, 1 }
  0x10   : > { %p975_p9 = por %p175_p6, %p52_p1  ;;  %p678_p13 = scmp.lt.s32.totalorder %s887_s23, 2 }
  0x11   : > { %s1167_s30 = scalar_select %p971_p8, 1, 0 }
  0x12   : > { %s1168_s6 = scalar_select %p975_p9, 1, 0 }
  0x13   : > { %s980_s7 = scalar_select %p43_p7, %s875_s20, %s45_s27  }
  0x14   : > { %p982_p11 = por %p181_p10, %p58_p3  ;;  %s989_s9 = sand.u32 1, %s875_s20  }
  0x15   : > { %s633_s10 = sshll.u32 %s989_s9, 3  ;;  %s656_s11 = sshll.u32 %s883_s22, 7 }
  0x16   : > { %s1169_s8 = scalar_select %p982_p11, 1, 0 }
  0x17   : > { %s998_s14 = scalar_lea.hbm %s1158_s0, %s656_s11  ;;  %s214_s15 = scalar_lea.vmem [#allocation2], %s633_s10 }
  0x18   : > { %s224_s16 = sshll.u32 %s214_s15, 4  ;;  %p1006_p0 = pnand %p678_p13, %p965_p4  ;;  %s1002_s16 = int_to_ptr.vmem [resolvable:$true] %s224_s16 }
  0x19   : > { %s211_s24 = scalar_lea.sflag [#allocation3], %s989_s9  ;;  %s741_s25 = scalar_lea.hbm %s998_s14, 128 }
  0x1a   : > { %p742_p3 = scmp.ne.s32.totalorder %s998_s14, %s741_s25  ;;  %p743_p5 = pneg %p1006_p0 }
  0x1b   : > { %s746_s28 = scalar_lea.hbm %s1158_s0, 256  ;;  %p747_p4 = scmp.lt.u32.totalorder %s998_s14, %s1158_s0 }
  0x1c   : > { %p744_p6 = pnand %p743_p5, %p742_p3  ;;  %p748_p10 = scmp.lt.u32.totalorder %s746_s28, %s741_s25 }
  0x1d   : > { %p750_p12 = scmp.lt.u32.totalorder %s741_s25, %s998_s14 }
  0x1e   : > { %p745_p7 = pneg %p744_p6  ;;  %p749_p13 = por %p748_p10, %p747_p4 }
  0x20   : > { %p751_p1 = por %p750_p12, %p749_p13 }
  0x22   : > { %p752_p2 = pnand %p751_p1, %p745_p7 }
  0x24   : > { %755 = shalt.err (!%p752_p2)
}
  0x25   : > { %s756_s15 = scalar_lea.vmem %s1002_s16, 128  ;;  %s889_s27 = smov [#allocation2]  }
  0x26   : > { %p757_p3 = scmp.ne.s32.totalorder %s1002_s16, %s756_s15  ;;  %s761_s29 = sshll.u32 %s889_s27, 4  ;;  %s762_s29 = int_to_ptr.vmem [resolvable:$false] %s761_s29 }
  0x27   : > { %s763_s12 = scalar_lea.vmem %s762_s29, 256  ;;  %p764_p9 = scmp.lt.s32.totalorder %s1002_s16, %s762_s29 }
  0x28   : > { %p759_p6 = pnand %p757_p3, %p743_p5  ;;  %p765_p4 = scmp.lt.s32.totalorder %s763_s12, %s756_s15 }
  0x2a   : > { %p760_p11 = pneg %p759_p6  ;;  %p766_p10 = por %p765_p4, %p764_p9 }
  0x2c   : > { %p767_p12 = pnand %p766_p10, %p760_p11 }
  0x2e   : > { %770 = shalt.err (!%p767_p12)
}
  0x2f   : > { %670 = dma.hbm_to_vmem [thread:$0]  (!%p1006_p0), %s998_s14, 128, %s1002_s16, %s211_s24  }
  0x30   : > { %p1171_p1 = scmp.lt.s32.totalorder %s887_s23, 3  ;;  %p1172_p2 = scmp.ge.s32.totalorder %s887_s23, 1 }
  0x31   : > { %s1051_s15 = scalar_lea.hbm %s1159_s1, %s656_s11  ;;  %s235_s27 = scalar_lea.vmem [#allocation5], %s633_s10 }
  0x32   : > { %p1042_p7 = pnand %p1172_p2, %p1171_p1  ;;  %s245_s29 = sshll.u32 %s235_s27, 4  ;;  %s246_s29 = int_to_ptr.vmem [resolvable:$true] %s245_s29 }
  0x33   : > { %s232_s14 = scalar_lea.sflag [#allocation6], %s989_s9  ;;  %s771_s16 = scalar_lea.hbm %s1051_s15, 128 }
  0x34   : > { %s1173_s25 = scalar_select %p1042_p7, 1, 0 }
  0x35   : > { %p772_p9 = scmp.ne.s32.totalorder %s1051_s15, %s771_s16  ;;  %s776_s11 = scalar_lea.hbm %s1159_s1, 256 }
  0x36   : > { %p777_p3 = scmp.lt.u32.totalorder %s1051_s15, %s1159_s1  ;;  %p778_p6 = scmp.lt.u32.totalorder %s776_s11, %s771_s16 }
  0x37   : > { %p774_p11 = pnand %p772_p9, %p743_p5  ;;  %p780_p10 = scmp.lt.u32.totalorder %s771_s16, %s1051_s15 }
  0x38   : > { %p779_p4 = por %p778_p6, %p777_p3 }
  0x39   : > { %p775_p13 = pneg %p774_p11 }
  0x3a   : > { %p781_p12 = por %p780_p10, %p779_p4 }
  0x3c   : > { %p782_p1 = pnand %p781_p12, %p775_p13 }
  0x3e   : > { %785 = shalt.err (!%p782_p1)
}
  0x3f   : > { %s786_s9 = scalar_lea.vmem %s246_s29, 128  ;;  %s890_s10 = smov [#allocation5]  }
  0x40   : > { %p787_p2 = scmp.ne.s32.totalorder %s246_s29, %s786_s9  ;;  %s791_s27 = sshll.u32 %s890_s10, 4  ;;  %s792_s27 = int_to_ptr.vmem [resolvable:$false] %s791_s27 }
  0x41   : > { %s793_s24 = scalar_lea.vmem %s792_s27, 256  ;;  %p794_p8 = scmp.lt.s32.totalorder %s246_s29, %s792_s27 }
  0x42   : > { %p789_p9 = pnand %p787_p2, %p743_p5  ;;  %p795_p7 = scmp.lt.s32.totalorder %s793_s24, %s786_s9 }
  0x44   : > { %p790_p11 = pneg %p789_p9  ;;  %p796_p3 = por %p795_p7, %p794_p8 }
  0x46   : > { %p797_p6 = pnand %p796_p3, %p790_p11 }
  0x48   : > { %800 = shalt.err (!%p797_p6)
}
  0x49   : > { %673 = dma.hbm_to_vmem [thread:$0]  (!%p1006_p0), %s1051_s15, 128, %s246_s29, %s232_s14  }
  0x4a   : > { %p1174_p13 = scmp.ne.s32.totalorder %s1173_s25, 0 }
  0x4b   : > { %s1078_s16 = sand.u32 (!%p1174_p13), 1, %s871_s19   ;;  %p1175_p8 = scmp.ne.s32.totalorder (!%p1174_p13), %s1167_s30, 0 }
  0x4c   : > { %254 = sbr.rel (%p1174_p13) target bundleno = 355 (0x163), region = 40  ;;  %s1081_s12 = sshll.u32 (!%p1174_p13), %s1078_s16, 3 }
  0x4d   : > { %s257_s11 = scalar_lea.sflag (!%p1174_p13), [#allocation3], %s1078_s16  ;;  %s260_s28 = scalar_lea.vmem (!%p1174_p13), [#allocation2], %s1081_s12 }
  0x53   : > { %854 = dma.done.wait (%p1175_p8), %s257_s11, 128  }
  0x54   : > { %856 = vsyncadd (%p1175_p8), %s257_s11, 4294967168  ;;  %s266_s17 = scalar_lea.sflag [#allocation6], %s1078_s16  ;;  %s269_s25 = scalar_lea.vmem [#allocation5], %s1081_s12 }
  0x55   : > { %858 = dma.done.wait (%p1175_p8), %s266_s17, 128  }
  0x56   : > { %860 = vsyncadd (%p1175_p8), %s266_s17, 4294967168  ;;  %v891_v0 = vmov 0.0   ;;  %v892_v1 = vmov 0   ;;  %v305_v2 = vld [vmem:[%s269_s25] sm:$0xff]  ;;  %vm314_vm0 = vcmask 1043456   ;;  %v304_v3 = vld [vmem:[%s260_s28] sm:$0xff] }
  0x57   : > { %383 = vmatprep.mubr.f32.mxu1 %v891_v0  ;;  %463 = vmatprep.mubr.f32.mxu0 %v891_v0  ;;  %v309_v4 = vcombine.high %v305_v2, %v305_v2  ;;  %v391_v5 = vcombine.high %v304_v3, %v304_v3  ;;  %v470_v6 = vld [vmem:[%s1162_s4] sm:$0xf]  ;;  %vm310_vm1 = vcmask 31744   ;;  %v490_v24 = vsub.f32 %v305_v2, %v304_v3  ;;  %s658_s10 = sshll.u32 %s879_s21, 7  ;;  %s300_s27 = scalar_lea.vmem [#allocation7], %s1081_s12 }
  0x58   : > { %730 = vset.pattern.permute.xlu0 %v892_v1  ;;  %v307_v7 = vld [vmem:[%s1161_s3] sm:$0xf]  ;;  %s519_s24 = sshll.u32 %s300_s27, 4  ;;  %s1109_s17 = scalar_lea.hbm %s1163_s5, %s658_s10  ;;  %s1111_s24 = int_to_ptr.vmem [resolvable:$true] %s519_s24 }
  0x59   : > { %v306_v8 = vld [vmem:[%s1160_s2] sm:$0xf]  ;;  %473 = vperm.xlu0 %730, %v470_v6   ;;  %643 = vmatprep.subr.msk.mxu1 %vm314_vm0, %v309_v4  ;;  %v492_v25 = vcombine.high %v490_v24, %v490_v24  ;;  %s503_s25 = scalar_lea.sflag [#allocation4], %s1078_s16  ;;  %s801_s15 = scalar_lea.vmem %s1111_s24, 128 }
  0x5a   : > { %646 = vmatprep.subr.msk.mxu0 %vm314_vm0, %v391_v5  ;;  %644 = vmatpush1.msk.msra.mxu1 %vm314_vm0, %v305_v2  ;;  %p802_p0 = scmp.ne.s32.totalorder %s1111_s24, %s801_s15  ;;  %p1176_p5 = scmp.ne.s32.totalorder %s1168_s6, 0 }
  0x5b   : > { %647 = vmatpush1.msk.msra.mxu0 %vm314_vm0, %v304_v3  ;;  %645 = vmatmul.mubr.msk.f32.vlgmr.msra.gmra.mrb[0].mxu1 %vm310_vm1, %v307_v7  ;;  %s893_s21 = smov [#allocation7]  }
  0x5c   : > { %648 = vmatmul.mubr.msk.f32.vlgmr.msra.gmra.mrb[0].mxu0 %vm310_vm1, %v306_v8  ;;  %p803_p7 = pnand %p802_p0, %p1176_p5  ;;  %s805_s12 = sshll.u32 %s893_s21, 4  ;;  %s806_s12 = int_to_ptr.vmem [resolvable:$false] %s805_s12 }
  0x5d   : > { %s807_s29 = scalar_lea.vmem %s806_s12, 256  ;;  %p808_p10 = scmp.lt.s32.totalorder %s1111_s24, %s806_s12 }
  0x5e   : > { %p804_p4 = pneg %p803_p7  ;;  %p809_p12 = scmp.lt.s32.totalorder %s807_s29, %s801_s15 }
  0x60   : > { %p810_p1 = por %p809_p12, %p808_p10 }
  0x62   : > { %p811_p2 = pnand %p810_p1, %p804_p4 }
  0xd8   : > { %v474_v9 = vpop.permute.xlu0 %473 }
 0x12e   : > { %v385_v10 = vpop.f32.mrb[0].mxu1 }
 0x12f   : > { %v465_v11 = vpop.f32.mrb[0].mxu0  ;;  %v387_v13 = vpop.f32.mrb[1].mxu1 }
 0x130   : > { %v466_v12 = vadd.f32 %v465_v11, %v385_v10  ;;  %v467_v14 = vpop.f32.mrb[1].mxu0 }
 0x131   : > { %v468_v15 = vadd.f32 %v467_v14, %v387_v13 }
 0x132   : > { %v476_v16 = vadd.f32 %v474_v9, %v466_v12 }
 0x133   : > { %v477_v17 = vadd.f32 %v474_v9, %v468_v15 }
 0x134   : > { %v649_v18 = vmul.f32 -1.442695, %v476_v16 }
 0x135   : > { %v650_v19 = vmul.f32 -1.442695, %v477_v17 }
 0x136   : > { %733 = vpow2.f32 %v649_v18 }
 0x137   : > { %735 = vpow2.f32 %v650_v19 }
 0x140   : > { %v734_v20 = vpop.eup %733 }
 0x141   : > { %v736_v21 = vpop.eup %735  ;;  %v484_v22 = vadd.f32 1.0, %v734_v20 }
 0x142   : > { %v485_v23 = vadd.f32 1.0, %v736_v21 }
 0x143   : > { %737 = vrcp.f32 %v484_v22 }
 0x144   : > { %739 = vrcp.f32 %v485_v23 }
 0x14d   : > { %v738_v26 = vpop.eup %737 }
 0x14e   : > { %v740_v27 = vpop.eup %739  ;;  %v494_v28 = vmul.f32 %v738_v26, %v490_v24 }
 0x14f   : > { %v495_v29 = vmul.f32 %v740_v27, %v492_v25 }
 0x151   : > { %v498_v30 = vcombine.low %v494_v28, %v495_v29 }
 0x153   : > { %v500_v31 = vadd.f32 %v498_v30, %v304_v3 }
 0x155   : > { %501 = vst [vmem:[%s300_s27] sm:$0xff] %v500_v31 }
 0x156   : > { %814 = shalt.err (!%p811_p2)
}
 0x157   : > { %s815_s16 = scalar_lea.hbm %s1109_s17, 128  ;;  %s819_s30 = scalar_lea.hbm %s1163_s5, 256 }
 0x158   : > { %p816_p9 = scmp.ne.s32.totalorder %s1109_s17, %s815_s16  ;;  %p820_p6 = scmp.lt.u32.totalorder %s1109_s17, %s1163_s5 }
 0x159   : > { %p821_p13 = scmp.lt.u32.totalorder %s819_s30, %s815_s16  ;;  %p823_p0 = scmp.lt.u32.totalorder %s815_s16, %s1109_s17 }
 0x15a   : > { %p817_p11 = pnand %p816_p9, %p1176_p5 }
 0x15b   : > { %p822_p8 = por %p821_p13, %p820_p6 }
 0x15c   : > { %p818_p3 = pneg %p817_p11 }
 0x15d   : > { %p824_p7 = por %p823_p0, %p822_p8 }
 0x15f   : > { %p825_p4 = pnand %p824_p7, %p818_p3 }
 0x161   : > { %828 = shalt.err (!%p825_p4)
}
 0x162   : > { %665 = dma.vmem_to_hbm [thread:$0]  (%p1176_p5), %s1111_s24, 128, %s1109_s17, %s503_s25  }
 0x163 PF: > { %s531_s27 = sand.u32 1, %s867_s18   ;;  %p1177_p10 = scmp.ne.s32.totalorder %s1169_s8, 0 }
 0x164   : > { %p1178_p12 = scmp.ge.s32.totalorder %s887_s23, 2  ;;  %s532_s11 = scalar_lea.sflag [#allocation4], %s531_s27 }
 0x166   : > { %p675_p1 = pnand %p1178_p12, %p1177_p10 }
 0x168   : > { %862 = dma.done.wait (!%p675_p1), %s532_s11, 128  }
 0x169   : > { %864 = vsyncadd (!%p675_p1), %s532_s11, 4294967168  ;;  %s24_s23 = sadd.s32 1, %s887_s23   ;;  %s1179_s18 = smov %s871_s19 }
 0x16a   : > { %p21_p2 = scmp.ge.s32.totalorder %s24_s23, 4   ;;  %s1180_s19 = smov %s875_s20 }
 0x16b   : > { %s1181_s20 = smov %s980_s7  ;;  %s1182_s21 = smov %s883_s22 }
 0x16c   : > { %s1183_s22 = smov %s1185_s26  ;;  %23 = sbr.rel (!%p21_p2) target bundleno = 8 (0x8), region = 98 }
 0x173   :  { %537 = vsyncpa [#allocation3], 1 }
 0x174   :  { %539 = vsyncpa [#allocation3 + $0x1], 1 }
 0x175   :  { %540 = vsyncpa [#allocation6], 1 }
 0x176   :  { %542 = vsyncpa [#allocation6 + $0x1], 1 }
 0x177   :  { %543 = vsyncpa [#allocation4], 1 }
 0x178   :  { %545 = vsyncpa [#allocation4 + $0x1], 1 }

</bundles_post_ra>
